<compile_context>
chip_gen: v7x
topology: tpu7x:2x2x1
jax: 0.10.0
libtpu: 0.0.40
codegen_flags: <defaults>
</compile_context>

<pallas_src>
import functools
import math

import jax
import jax.numpy as jnp
from jax import lax
from jax.experimental import pallas as pl
from jax.experimental.pallas import tpu as pltpu


def _round_up(x, m):
    return ((x + m - 1) // m) * m


def _embed_kernel(ids_ref, lut_ref, out_ref, *, scale, block_tokens):
    """Gather `block_tokens` rows of the VMEM-resident table into one output tile.

    ids_ref : SMEM scalar-prefetch ref, flattened (padded) token ids.
    lut_ref : VMEM ref, full (vocab, d_model) embedding table (grid-resident).
    out_ref : VMEM ref, (block_tokens, d_model) output tile.
    """
    base = pl.program_id(0) * block_tokens

    def body(t, carry):
        idx = ids_ref[base + t]                      # cheap SMEM scalar read
        row = lut_ref[pl.ds(idx, 1), :]              # (1, d_model) VMEM load
        out_ref[pl.ds(t, 1), :] = row * scale
        return carry

    lax.fori_loop(0, block_tokens, body, 0, unroll=False)


def embeddings_forward(ids, lut, *, block_tokens=256):
    """ids: int32 [B, S]; lut: float [vocab, d_model] -> [B, S, d_model]."""
    B, S = ids.shape
    vocab, d_model = lut.shape
    N = B * S
    scale = math.sqrt(d_model)

    # Clamp ids so an out-of-range token can never index outside the table.
    flat_ids = jnp.clip(ids.reshape(N).astype(jnp.int32), 0, vocab - 1)

    # Token tile: multiple of 8 (f32 sublane density), no larger than needed.
    T = min(block_tokens, _round_up(N, 8))
    N_pad = _round_up(N, T)
    if N_pad != N:
        flat_ids = jnp.pad(flat_ids, (0, N_pad - N))  # pad with valid id 0
    grid = (N_pad // T,)

    # VMEM budget: resident table + double-buffered output tiles + slack.
    itemsize = jnp.dtype(lut.dtype).itemsize
    lut_bytes = vocab * d_model * itemsize
    out_tile_bytes = T * d_model * itemsize
    vmem_limit = int(min(max(lut_bytes + 2 * out_tile_bytes + (4 << 20), 32 << 20),
                         100 << 20))
    # TODO(synk): for tables that exceed the VMEM budget (~48 MiB usable on v7x,
    # ~100 MiB on v5e/v6e), fall back to an HBM-resident lut (memory_space=pl.ANY)
    # with a manual double-buffered multi-DMA gather.

    kernel = functools.partial(_embed_kernel, scale=scale, block_tokens=T)

    out = pl.pallas_call(
        kernel,
        out_shape=jax.ShapeDtypeStruct((N_pad, d_model), lut.dtype),
        grid_spec=pltpu.PrefetchScalarGridSpec(
            num_scalar_prefetch=1,
            grid=grid,
            in_specs=[
                # Whole table, same block every step -> VMEM-resident across grid.
                pl.BlockSpec((vocab, d_model), lambda i, ids: (0, 0)),
            ],
            out_specs=pl.BlockSpec((T, d_model), lambda i, ids: (i, 0)),
        ),
        compiler_params=pltpu.CompilerParams(
            dimension_semantics=("parallel",),
            vmem_limit_bytes=vmem_limit,
        ),
    )(flat_ids, lut)

    return out[:N].reshape(B, S, d_model)


if __name__ == "__main__":
    key = jax.random.PRNGKey(0)
    k_lut, k_ids, k_ids2 = jax.random.split(key, 3)

    # Small shapes consistent with the module's forward.
    vocab, d_model = 64, 128
    # nn.Embedding default init: N(0, 1)
    lut = jax.random.normal(k_lut, (vocab, d_model), dtype=jnp.float32)

    # Case 1: B=2, S=8 (single grid step).
    B, S = 2, 8
    ids = jax.random.randint(k_ids, (B, S), minval=0, maxval=vocab, dtype=jnp.int32)
    out = jax.block_until_ready(embeddings_forward(ids, lut))
    ref = jnp.take(lut, ids, axis=0) * math.sqrt(d_model)
    assert out.shape == (B, S, d_model)
    assert jnp.allclose(out, ref, atol=1e-5, rtol=1e-5)

    # Case 2: non-multiple-of-tile token count + multiple grid steps (exercises
    # padding and the grid loop with a small block_tokens).
    B2, S2 = 3, 5
    ids2 = jax.random.randint(k_ids2, (B2, S2), minval=0, maxval=vocab, dtype=jnp.int32)
    out2 = jax.block_until_ready(embeddings_forward(ids2, lut, block_tokens=8))
    ref2 = jnp.take(lut, ids2, axis=0) * math.sqrt(d_model)
    assert out2.shape == (B2, S2, d_model)
    assert jnp.allclose(out2, ref2, atol=1e-5, rtol=1e-5)

    print("KERNEL_OK")
</pallas_src>

<mosaic_0001>
module attributes {stable_mosaic.version = 11 : i64} {
  func.func @_embed_kernel(%arg0: i32, %arg1: memref<16xi32, #tpu.memory_space<smem>>, %arg2: memref<64x128xf32, #tpu.memory_space<vmem>>, %arg3: memref<16x128xf32, #tpu.memory_space<vmem>>) attributes {dimension_semantics = [#tpu.dimension_semantics<parallel>], iteration_bounds = array<i64: 1>, scalar_prefetch = 1 : i64, scratch_operands = 0 : i64, tpu.core_type = #tpu.core_type<tc>, window_params = [{pipeline_mode = #tpu.pipeline_mode<synchronous>, transform_indices = @transform_0, window_bounds = array<i64: 64, 128>}, {transform_indices = @transform_1, window_bounds = array<i64: 16, 128>}]} {
    %c16_i32 = arith.constant 16 : i32
    %0 = arith.muli %arg0, %c16_i32 : i32
    %c0_i32 = arith.constant 0 : i32
    %c16_i32_0 = arith.constant 16 : i32
    %1 = arith.addi %c0_i32, %c16_i32_0 : i32
    %c1_i32 = arith.constant 1 : i32
    scf.for %arg4 = %c0_i32 to %1 step %c1_i32  : i32 {
      %2 = arith.addi %0, %arg4 : i32
      %3 = arith.index_cast %2 : i32 to index
      %4 = memref.load %arg1[%3] : memref<16xi32, #tpu.memory_space<smem>>
      %5 = arith.index_cast %4 : i32 to index
      %c0 = arith.constant 0 : index
      %6 = vector.load %arg2[%5, %c0] : memref<64x128xf32, #tpu.memory_space<vmem>>, vector<1x128xf32>
      %cst = arith.constant 11.3137083 : f32
      %7 = vector.broadcast %cst : f32 to vector<1x128xf32>
      %8 = arith.mulf %6, %7 : vector<1x128xf32>
      %9 = arith.index_cast %arg4 : i32 to index
      %c0_2 = arith.constant 0 : index
      %10 = vector.load %arg3[%9, %c0_2] : memref<16x128xf32, #tpu.memory_space<vmem>>, vector<1x128xf32>
      tpu.vector_store %arg3[%9, %c0_2], %8 {strides = array<i32>} : memref<16x128xf32, #tpu.memory_space<vmem>>, vector<1x128xf32>,
    }
    %c16_i32_1 = arith.constant 16 : i32
    return
  }
  func.func @transform_0(%arg0: i32, %arg1: memref<16xi32, #tpu.memory_space<smem>>) -> (i32, i32) {
    %c0_i32 = arith.constant 0 : i32
    %c0_i32_0 = arith.constant 0 : i32
    %c0_i32_1 = arith.constant 0 : i32
    return %c0_i32, %c0_i32_0 : i32, i32
  }
  func.func @transform_1(%arg0: i32, %arg1: memref<16xi32, #tpu.memory_space<smem>>) -> (i32, i32) {
    %c0_i32 = arith.constant 0 : i32
    %c0_i32_0 = arith.constant 0 : i32
    return %arg0, %c0_i32 : i32, i32
  }
}

</mosaic_0001>

<bundles_post_ra>
// kernel: tpu_custom_call.1
= control target key start
LH: loop header
LB: loop body
LE: loop exit
PB: predicated region body
PF: predicated region fallthrough
CT: control target
= control target key end

     0   :  { %s209_s0 = inlined_call_operand.hbm [shape: s32[16], index: 0, kind: input, shape index: {}]   ;;  %s210_s1 = inlined_call_operand.hbm [shape: f32[64,128], index: 1, kind: input, shape index: {}]   ;;  %s211_s2 = inlined_call_operand.hbm [shape: f32[16,128], index: 2, kind: output, shape index: {}]  }
   0x1   :  { %s79_s11 = scalar_lea.hbm %s209_s0, 16 }
   0x2   :  { %p80_p0 = scmp.ne.s32.totalorder %s209_s0, %s79_s11  ;;  %p83_p1 = scmp.lt.u32.totalorder %s79_s11, %s209_s0 }
   0x4   :  { %p85_p2 = pnand %p83_p1, %p80_p0 }
   0x6   :  { %88 = shalt.err (!%p85_p2)  }
   0x7   :  { %s147_s16 = smov [#allocation3]  }
   0x8   :  { %8 = dma.hbm_to_smem %s209_s0, 16, %s147_s16, [#allocation2] }
   0x9   :  { %137 = dma.done.wait [#allocation2], 16 }
   0xa   :  { %138 = vsyncadd [#allocation2], 4294967280 }
   0xb   :  { %10 = sfence }
   0xc   :  { %11 = vsyncpa [#allocation5], 0 }
   0xd   :  { %12 = vsyncpa [#allocation6], 0  ;;  %s148_s19 = smov [#allocation4]   ;;  %s89_s23 = scalar_lea.hbm %s210_s1, 1024 }
   0xe   :  { %s18_s20 = sshll.u32 %s148_s19, 4  ;;  %p90_p3 = scmp.ne.s32.totalorder %s210_s1, %s89_s23  ;;  %s19_s20 = int_to_ptr.vmem [resolvable:$true] %s18_s20 }
   0xf   :  { %p93_p4 = scmp.lt.u32.totalorder %s89_s23, %s210_s1 }
  0x11   :  { %p95_p5 = pnand %p93_p4, %p90_p3 }
  0x13   :  { %98 = shalt.err (!%p95_p5)
}
  0x14   :  { %s99_s0 = scalar_lea.vmem %s19_s20, 1024  ;;  %p104_p7 = scmp.lt.s32.totalorder %s19_s20, %s19_s20 }
  0x15   :  { %p100_p6 = scmp.ne.s32.totalorder %s19_s20, %s99_s0  ;;  %p105_p8 = scmp.lt.s32.totalorder %s99_s0, %s99_s0 }
  0x17   :  { %p106_p9 = por %p105_p8, %p104_p7 }
  0x19   :  { %p107_p10 = pnand %p106_p9, %p100_p6 }
  0x1b   :  { %110 = shalt.err (!%p107_p10)
}
  0x1c   :  { %s149_s28 = smov 128   ;;  %s150_s29 = smov 8  }
  0x1d   :  { %24 = dma.hbm_to_vmem [thread:$0]  %s210_s1, 1024, %s19_s20, [#allocation5], %s149_s28, %s149_s28, %s150_s29  }
  0x1e   :  { %139 = dma.done.wait [#allocation5], 1024  }
  0x1f   :  { %140 = vsyncadd [#allocation5], 4294966272  ;;  %s143_s4 = smov 0  }
  0x20 LB: > { %s36_s5 = sld [smem:[#allocation3 + %s145_s4]]  ;;  %s40_s7 = scalar_lea.vmem [#allocation7], %s145_s4  ;;  %s145_s4 = sphi %s143_s4, %s34_s4  }
  0x21   : > { %s34_s4 = sadd.s32 1, %s145_s4  }
  0x22   : > { %p31_p11 = scmp.ge.s32.totalorder %s34_s4, 16  }
  0x23   :  { %s151_s8 = smov (%p31_p11), [#allocation7]  }
  0x24   :  { %33 = sbr.rel (!%p31_p11) target bundleno = 32 (0x20), region = 37  ;;  %s47_s9 = sshll.u32 (%p31_p11), %s151_s8, 4  ;;  %s48_s9 = int_to_ptr.vmem [resolvable:$true] %s47_s9 }
  0x25   :  { %s111_s1 = scalar_lea.vmem (%p31_p11), %s48_s9, 256  ;;  %p116_p13 = scmp.lt.s32.totalorder (%p31_p11), %s48_s9, %s48_s9 }
  0x26   : > { %s37_s6 = scalar_lea.vmem [#allocation4], %s36_s5  ;;  %p112_p12 = scmp.ne.s32.totalorder (%p31_p11), %s48_s9, %s111_s1 }
  0x27   : > { %v38_v0 = vld [vmem:[%s37_s6] sm:$0x1]  ;;  %p117_p0 = scmp.lt.s32.totalorder (%p31_p11), %s111_s1, %s111_s1 }
  0x28   : > { %v39_v1 = vmul.f32 11.313708, %v38_v0 }
  0x29   :  { %p118_p1 = por (%p31_p11), %p117_p0, %p116_p13 }
  0x2a   : > { %41 = vst [vmem:[%s40_s7] sm:$0x1] %v39_v1 }
  0x2b   :  { %p119_p2 = pnand %p118_p1, %p112_p12 }
  0x2d   :  { %122 = shalt.err (!%p119_p2)
}
  0x2e   :  { %s123_s12 = scalar_lea.hbm %s211_s2, 256 }
  0x2f   :  { %p124_p3 = scmp.ne.s32.totalorder %s211_s2, %s123_s12  ;;  %p127_p4 = scmp.lt.u32.totalorder %s123_s12, %s211_s2 }
  0x31   :  { %p129_p5 = pnand %p127_p4, %p124_p3 }
  0x33   :  { %132 = shalt.err (!%p129_p5)
}
  0x34   :  { %53 = dma.vmem_to_hbm [thread:$0]  %s48_s9, 256, %s211_s2, [#allocation6], %s149_s28, %s149_s28, %s150_s29  }
  0x35   :  { %141 = dma.done.wait [#allocation6], 256  }
  0x36   :  { %142 = vsyncadd [#allocation6], 4294967040 }
  0x37   :  { %57 = vsyncpa [#allocation5], 1 }
  0x38   :  { %58 = vsyncpa [#allocation6], 1 }

</bundles_post_ra>
